<compile_context>
chip_gen: v7x
topology: tpu7x:2x2x1
jax: 0.10.0
libtpu: 0.0.40
codegen_flags: <defaults>
</compile_context>

<pallas_src>
import functools

import jax
import jax.numpy as jnp
from jax import lax
from jax.experimental import pallas as pl
from jax.experimental.pallas import tpu as pltpu


# ----------------------------- VMEM budgeting -----------------------------
# Generation aware: v7x has 64 MiB VMEM per TensorCore, v5e/v6e have 128 MiB.
try:
    _VMEM_PHYS = int(pltpu.get_tpu_info().vmem_capacity_bytes)
except Exception:  # no TPU visible / older API -> use the conservative (v7x) floor
    _VMEM_PHYS = 64 * 1024 * 1024
_VMEM_LIMIT = min((_VMEM_PHYS * 3) // 4, 96 * 1024 * 1024)   # scoped VMEM we request
_TILE_BUDGET = min(_VMEM_LIMIT // 2, 32 * 1024 * 1024)       # streamed tiles + accumulators
_MAX_TILE_ROWS = 4096


def _round_up(x, m):
    return ((x + m - 1) // m) * m


def _row_bytes(cols, itemsize):
    # VMEM rows are lane-padded to multiples of 128 elements.
    return _round_up(cols, 128) * itemsize


def _choose_tile(batch, row_stream_bytes, row_acc_bytes=0):
    """Largest multiple-of-8 row tile whose double-buffered streamed inputs plus
    persistent accumulator fit the VMEM tile budget."""
    per_row = 2 * row_stream_bytes + row_acc_bytes   # x2 = double buffering
    tb = _TILE_BUDGET // max(per_row, 1)
    tb = min(tb, _MAX_TILE_ROWS, _round_up(batch, 8))
    tb = max(8, (tb // 8) * 8)
    return int(tb)


def _split_tiles(n_tiles):
    """Leading 'parallel' group axis (sharded across TensorCores on multi-TC chips)."""
    if n_tiles >= 2 and n_tiles % 2 == 0:
        return 2, n_tiles // 2
    return 1, n_tiles


def _pad_rows(x, rows, value=0):
    if x.shape[0] == rows:
        return x
    cfg = [(0, rows - x.shape[0])] + [(0, 0)] * (x.ndim - 1)
    return jnp.pad(x, cfg, constant_values=value)


def _compiler_params():
    return pltpu.CompilerParams(
        dimension_semantics=("parallel", "arbitrary"),
        vmem_limit_bytes=_VMEM_LIMIT)


def _partial_out(groups):
    # Lane-dense (8,128) partial-sum block per group (unmasked vst at finalize).
    shape = jax.ShapeDtypeStruct((groups * 8, 128), jnp.float32)
    spec = pl.BlockSpec((8, 128), lambda g, i: (g, 0))
    return shape, spec


def _reduce_partials(out):
    return jnp.sum(out[::8, 0])


def _pow(x, g):
    if float(g) == 2.0:
        return x * x
    return jnp.power(x, g)


def _sum_all_keepdims(x):
    return jnp.sum(jnp.sum(x, axis=1, keepdims=True), axis=0, keepdims=True)


def _fill(out_ref, val_1x1):
    out_ref[...] = jnp.broadcast_to(val_1x1, out_ref.shape)


# ----------------------------- Pallas kernels -----------------------------

def _weighted_nll_kernel(logits_ref, tgt_ref, cw_ref, num_ref, den_ref,
                         num_acc, den_acc, *, from_logits):
    """Weighted softmax-CE / NLL partial sums (torch CrossEntropyLoss / NLLLoss)."""
    i = pl.program_id(1)

    @pl.when(i == 0)
    def _():
        num_acc[...] = jnp.zeros_like(num_acc)
        den_acc[...] = jnp.zeros_like(den_acc)

    x = logits_ref[...].astype(jnp.float32)                   # (tb, C)
    tgt = tgt_ref[...]                                        # (tb, 1) int32; -1 = padding
    classes = lax.broadcasted_iota(jnp.int32, x.shape, 1)
    one_hot = (classes == tgt).astype(jnp.float32)            # padded rows -> all-zero
    cw = cw_ref[...].astype(jnp.float32)                      # (1, C) resident

    if from_logits:
        m = jnp.max(x, axis=-1, keepdims=True)
        lse = m + jnp.log(jnp.sum(jnp.exp(x - m), axis=-1, keepdims=True))
        nll_per_class = lse - x
    else:
        nll_per_class = -x                                    # x is already log-probs

    sel = one_hot * cw
    num_acc[...] += jnp.sum(sel * nll_per_class, axis=-1, keepdims=True)   # (tb, 1)
    den_acc[...] += jnp.sum(sel, axis=-1, keepdims=True)                   # (tb, 1)

    @pl.when(i == pl.num_programs(1) - 1)
    def _():
        _fill(num_ref, _sum_all_keepdims(num_acc[...]))
        _fill(den_ref, _sum_all_keepdims(den_acc[...]))


def _softmax_focal_kernel(logits_ref, tgt_ref, out_ref, acc_ref, *, alpha, gamma):
    """FocalLoss(activation_type='SOFTMAX') partial sums (sum over classes per row)."""
    i = pl.program_id(1)

    @pl.when(i == 0)
    def _():
        acc_ref[...] = jnp.zeros_like(acc_ref)

    x = logits_ref[...].astype(jnp.float32)
    tgt = tgt_ref[...]                                        # (tb, 1) int32; -1 = padding
    classes = lax.broadcasted_iota(jnp.int32, x.shape, 1)
    one_hot = (classes == tgt).astype(jnp.float32)

    # Analytic log-softmax: one log per row instead of one per element
    # (differs from log(softmax + eps) by O(eps)).
    m = jnp.max(x, axis=-1, keepdims=True)
    e = jnp.exp(x - m)
    se = jnp.sum(e, axis=-1, keepdims=True)
    p = e * (1.0 / se)
    logp = (x - m) - jnp.log(se)
    loss = -alpha * one_hot * _pow(1.0 - p, gamma) * logp
    acc_ref[...] += jnp.sum(loss, axis=-1, keepdims=True)     # (tb, 1)

    @pl.when(i == pl.num_programs(1) - 1)
    def _():
        _fill(out_ref, _sum_all_keepdims(acc_ref[...]))


def _sigmoid_focal_kernel(logits_ref, tgt_ref, out_ref, acc_ref,
                          *, alpha, gamma, valid_rows, needs_mask):
    """FocalLoss(activation_type='SIGMOID') partial sums (elementwise loss)."""
    i = pl.program_id(1)

    @pl.when(i == 0)
    def _():
        acc_ref[...] = jnp.zeros_like(acc_ref)

    x = logits_ref[...].astype(jnp.float32)
    t = tgt_ref[...].astype(jnp.float32)
    # Stable softplus form; argument of log is in [1, 2] so plain log is exact enough.
    sp = jnp.log(1.0 + jnp.exp(-jnp.abs(x)))
    logp = jnp.minimum(x, 0.0) - sp        # log sigmoid(x)
    log1mp = jnp.minimum(-x, 0.0) - sp     # log sigmoid(-x) == log(1 - p)
    p = jnp.exp(logp)
    loss = (-alpha * t * _pow(1.0 - p, gamma) * logp
            - (1.0 - alpha) * (1.0 - t) * _pow(p, gamma) * log1mp)

    if needs_mask:
        blk = pl.program_id(0) * pl.num_programs(1) + i
        row = blk * x.shape[0] + lax.broadcasted_iota(jnp.int32, x.shape, 0)
        loss = jnp.where(row < valid_rows, loss, 0.0)

    acc_ref[...] += loss                                      # (tb, C), pure VPU add

    @pl.when(i == pl.num_programs(1) - 1)
    def _():
        _fill(out_ref, _sum_all_keepdims(acc_ref[...]))


def _bce_with_logits_kernel(logits_ref, tgt_ref, cw_ref, out_ref, acc_ref,
                            *, valid_rows, needs_mask):
    """torch.nn.BCEWithLogitsLoss(weight=class_weight) partial sums."""
    i = pl.program_id(1)

    @pl.when(i == 0)
    def _():
        acc_ref[...] = jnp.zeros_like(acc_ref)

    x = logits_ref[...].astype(jnp.float32)
    t = tgt_ref[...].astype(jnp.float32)
    cw = cw_ref[...].astype(jnp.float32)                      # (1, C) resident
    per = cw * (jnp.maximum(x, 0.0) - x * t + jnp.log(1.0 + jnp.exp(-jnp.abs(x))))

    if needs_mask:
        blk = pl.program_id(0) * pl.num_programs(1) + i
        row = blk * x.shape[0] + lax.broadcasted_iota(jnp.int32, x.shape, 0)
        per = jnp.where(row < valid_rows, per, 0.0)

    acc_ref[...] += per                                       # (tb, C), pure VPU add

    @pl.when(i == pl.num_programs(1) - 1)
    def _():
        _fill(out_ref, _sum_all_keepdims(acc_ref[...]))


def _half_sq_norm_kernel(diff_ref, out_ref, acc_ref):
    """0.5 * sum(diff**2) over all parent-child weight-row differences (row tiled)."""
    i = pl.program_id(0)

    @pl.when(i == 0)
    def _():
        acc_ref[...] = jnp.zeros_like(acc_ref)

    d = diff_ref[...].astype(jnp.float32)
    acc_ref[...] += _sum_all_keepdims(d * d)

    @pl.when(i == pl.num_programs(0) - 1)
    def _():
        out_ref[...] = 0.5 * acc_ref[...]


# ----------------------------- pallas_call wrappers -----------------------------

def weighted_nll_loss(logits, target, class_weight, *, from_logits):
    B, C = logits.shape
    cw = (jnp.ones((1, C), jnp.float32) if class_weight is None
          else jnp.asarray(class_weight, jnp.float32).reshape(1, C))
    tgt = jnp.asarray(target, jnp.int32).reshape(B, 1)

    stream = _row_bytes(C, logits.dtype.itemsize) + _row_bytes(1, 4)
    tb = _choose_tile(B, stream, row_acc_bytes=2 * _row_bytes(1, 4))
    n_tiles = pl.cdiv(B, tb)
    b_pad = n_tiles * tb
    groups, inner = _split_tiles(n_tiles)

    logits_p = _pad_rows(logits, b_pad)
    tgt_p = _pad_rows(tgt, b_pad, value=-1)        # -1 -> exactly zero contribution

    out_shape, out_spec = _partial_out(groups)
    kernel = functools.partial(_weighted_nll_kernel, from_logits=from_logits)
    num, den = pl.pallas_call(
        kernel,
        out_shape=(out_shape, out_shape),
        grid_spec=pltpu.PrefetchScalarGridSpec(
            num_scalar_prefetch=0, grid=(groups, inner),
            in_specs=[pl.BlockSpec((tb, C), lambda g, i: (g * inner + i, 0)),
                      pl.BlockSpec((tb, 1), lambda g, i: (g * inner + i, 0)),
                      pl.BlockSpec((1, C), lambda g, i: (0, 0))],
            out_specs=(out_spec, out_spec),
            scratch_shapes=[pltpu.VMEM((tb, 1), jnp.float32),
                            pltpu.VMEM((tb, 1), jnp.float32)]),
        compiler_params=_compiler_params(),
    )(logits_p, tgt_p, cw)
    return _reduce_partials(num) / _reduce_partials(den)


def softmax_focal_loss(logits, target, alpha, gamma):
    B, C = logits.shape
    tgt = jnp.asarray(target, jnp.int32).reshape(B, 1)

    stream = _row_bytes(C, logits.dtype.itemsize) + _row_bytes(1, 4)
    tb = _choose_tile(B, stream, row_acc_bytes=_row_bytes(1, 4))
    n_tiles = pl.cdiv(B, tb)
    b_pad = n_tiles * tb
    groups, inner = _split_tiles(n_tiles)

    logits_p = _pad_rows(logits, b_pad)
    tgt_p = _pad_rows(tgt, b_pad, value=-1)

    out_shape, out_spec = _partial_out(groups)
    kernel = functools.partial(_softmax_focal_kernel, alpha=alpha, gamma=gamma)
    out = pl.pallas_call(
        kernel,
        out_shape=out_shape,
        grid_spec=pltpu.PrefetchScalarGridSpec(
            num_scalar_prefetch=0, grid=(groups, inner),
            in_specs=[pl.BlockSpec((tb, C), lambda g, i: (g * inner + i, 0)),
                      pl.BlockSpec((tb, 1), lambda g, i: (g * inner + i, 0))],
            out_specs=out_spec,
            scratch_shapes=[pltpu.VMEM((tb, 1), jnp.float32)]),
        compiler_params=_compiler_params(),
    )(logits_p, tgt_p)
    return _reduce_partials(out) / B


def sigmoid_focal_loss(logits, target, alpha, gamma):
    B, C = logits.shape
    target = jnp.asarray(target)

    stream = _row_bytes(C, logits.dtype.itemsize) + _row_bytes(C, target.dtype.itemsize)
    tb = _choose_tile(B, stream, row_acc_bytes=_row_bytes(C, 4))
    n_tiles = pl.cdiv(B, tb)
    b_pad = n_tiles * tb
    groups, inner = _split_tiles(n_tiles)

    logits_p = _pad_rows(logits, b_pad)
    target_p = _pad_rows(target, b_pad)

    out_shape, out_spec = _partial_out(groups)
    kernel = functools.partial(_sigmoid_focal_kernel, alpha=alpha, gamma=gamma,
                               valid_rows=B, needs_mask=(b_pad != B))
    out = pl.pallas_call(
        kernel,
        out_shape=out_shape,
        grid_spec=pltpu.PrefetchScalarGridSpec(
            num_scalar_prefetch=0, grid=(groups, inner),
            in_specs=[pl.BlockSpec((tb, C), lambda g, i: (g * inner + i, 0)),
                      pl.BlockSpec((tb, C), lambda g, i: (g * inner + i, 0))],
            out_specs=out_spec,
            scratch_shapes=[pltpu.VMEM((tb, C), jnp.float32)]),
        compiler_params=_compiler_params(),
    )(logits_p, target_p)
    return _reduce_partials(out) / (B * C)


def bce_with_logits_loss(logits, target, class_weight):
    B, C = logits.shape
    target = jnp.asarray(target)
    cw = (jnp.ones((1, C), jnp.float32) if class_weight is None
          else jnp.asarray(class_weight, jnp.float32).reshape(1, C))

    stream = _row_bytes(C, logits.dtype.itemsize) + _row_bytes(C, target.dtype.itemsize)
    tb = _choose_tile(B, stream, row_acc_bytes=_row_bytes(C, 4))
    n_tiles = pl.cdiv(B, tb)
    b_pad = n_tiles * tb
    groups, inner = _split_tiles(n_tiles)

    logits_p = _pad_rows(logits, b_pad)
    target_p = _pad_rows(target, b_pad)

    out_shape, out_spec = _partial_out(groups)
    kernel = functools.partial(_bce_with_logits_kernel,
                               valid_rows=B, needs_mask=(b_pad != B))
    out = pl.pallas_call(
        kernel,
        out_shape=out_shape,
        grid_spec=pltpu.PrefetchScalarGridSpec(
            num_scalar_prefetch=0, grid=(groups, inner),
            in_specs=[pl.BlockSpec((tb, C), lambda g, i: (g * inner + i, 0)),
                      pl.BlockSpec((tb, C), lambda g, i: (g * inner + i, 0)),
                      pl.BlockSpec((1, C), lambda g, i: (0, 0))],
            out_specs=out_spec,
            scratch_shapes=[pltpu.VMEM((tb, C), jnp.float32)]),
        compiler_params=_compiler_params(),
    )(logits_p, target_p, cw)
    return _reduce_partials(out) / (B * C)


def half_sq_norm(diff):
    N, H = diff.shape
    tr = _choose_tile(N, _row_bytes(H, diff.dtype.itemsize))
    n_tiles = pl.cdiv(N, tr)
    n_pad = n_tiles * tr
    diff_p = _pad_rows(diff, n_pad)                 # zero rows contribute nothing
    out = pl.pallas_call(
        _half_sq_norm_kernel,
        out_shape=jax.ShapeDtypeStruct((1, 1), jnp.float32),
        grid_spec=pltpu.PrefetchScalarGridSpec(
            num_scalar_prefetch=0, grid=(n_tiles,),
            in_specs=[pl.BlockSpec((tr, H), lambda i: (i, 0))],
            out_specs=pl.BlockSpec((1, 1), lambda i: (0, 0)),
            scratch_shapes=[pltpu.VMEM((1, 1), jnp.float32)]),
        compiler_params=pltpu.CompilerParams(
            dimension_semantics=("arbitrary",), vmem_limit_bytes=_VMEM_LIMIT),
    )(diff_p)
    return out[0, 0]


# ----------------------------- module port -----------------------------

class ClassificationLoss:
    """JAX/Pallas port of moge.module.losses.ClassificationLoss (forward only)."""

    _SUPPORTED = ('SOFTMAX_CROSS_ENTROPY', 'NEGATIVE_LOG_LIKELIHOOD',
                  'SOFTMAX_FOCAL_CROSS_ENTROPY', 'SIGMOID_FOCAL_CROSS_ENTROPY',
                  'BCE_WITH_LOGITS')

    def __init__(self, n_classes, class_weight=None, multilabel=True, use_hierar=False,
                 loss_type='SOFTMAX_CROSS_ENTROPY', hierar_penalty=1e-6,
                 hierar_relations=None):
        if loss_type not in self._SUPPORTED:
            # TODO(synk): BCE / MULTI_LABEL_MARGIN / KL_DIVERGENCE not ported to Pallas.
            raise TypeError(f'Unsupported loss type: {loss_type}')
        self.n_classes = n_classes
        self.class_weight = (None if class_weight is None
                             else jnp.asarray(class_weight, jnp.float32))
        self.multilabel = multilabel
        self.use_hierar = use_hierar
        self.loss_type = loss_type
        self.hierar_penalty = hierar_penalty
        self.hierar_relations = hierar_relations
        # FocalLoss __init__ defaults used by the torch module. The kernels use the
        # eps-free analytic log (difference is O(epsilon) of the torch formulation).
        self.gamma, self.alpha, self.epsilon = 2.0, 0.25, 1e-9

    def _criterion(self, logits, target):
        lt = self.loss_type
        if lt in ('SOFTMAX_CROSS_ENTROPY', 'NEGATIVE_LOG_LIKELIHOOD'):
            return weighted_nll_loss(logits, target, self.class_weight,
                                     from_logits=(lt == 'SOFTMAX_CROSS_ENTROPY'))
        if lt == 'SOFTMAX_FOCAL_CROSS_ENTROPY':
            return softmax_focal_loss(logits, target, self.alpha, self.gamma)
        if lt == 'SIGMOID_FOCAL_CROSS_ENTROPY':
            return sigmoid_focal_loss(logits, target, self.alpha, self.gamma)
        if lt == 'BCE_WITH_LOGITS':
            return bce_with_logits_loss(logits, target, self.class_weight)
        raise TypeError(lt)

    def recursive_regularize(self, weight, hierar_relations):
        # Python-dict walk happens at trace time; the squared-norm reduction is a kernel.
        parents, children = [], []
        for i in range(weight.shape[0]):
            if hierar_relations is None or i not in hierar_relations:
                continue
            child_ids = hierar_relations[i]
            if not child_ids:
                continue
            for c in child_ids:
                parents.append(i)
                children.append(c)
        if not parents:
            return jnp.float32(0.0)
        p_rows = jnp.take(weight, jnp.asarray(parents, jnp.int32), axis=0)
        c_rows = jnp.take(weight, jnp.asarray(children, jnp.int32), axis=0)
        return half_sq_norm(p_rows - c_rows)

    def __call__(self, logits, target, linear_weight=None):
        logits = jnp.asarray(logits)   # keep native dtype; kernels upcast in VMEM
        if self.use_hierar:
            assert self.loss_type in ('BCE_WITH_LOGITS', 'SIGMOID_FOCAL_CROSS_ENTROPY')
            assert linear_weight is not None
            if not self.multilabel:
                target = jax.nn.one_hot(jnp.asarray(target), self.n_classes,
                                        dtype=logits.dtype)
            base = self._criterion(logits, jnp.asarray(target).astype(logits.dtype))
            reg = self.recursive_regularize(jnp.asarray(linear_weight, jnp.float32),
                                            self.hierar_relations)
            return base + self.hierar_penalty * reg
        else:
            if self.multilabel:
                assert self.loss_type in ('BCE_WITH_LOGITS', 'SIGMOID_FOCAL_CROSS_ENTROPY')
                target = jnp.asarray(target).astype(logits.dtype)
            elif self.loss_type not in ('SOFTMAX_CROSS_ENTROPY',
                                        'NEGATIVE_LOG_LIKELIHOOD',
                                        'SOFTMAX_FOCAL_CROSS_ENTROPY'):
                target = jax.nn.one_hot(jnp.asarray(target), self.n_classes,
                                        dtype=logits.dtype)
            return self._criterion(logits, target)


# ----------------------------- demo / self-check -----------------------------

if __name__ == "__main__":
    key = jax.random.PRNGKey(0)
    B, C, H = 16, 32, 32
    k1, k2, k3, k4 = jax.random.split(key, 4)

    logits = jax.random.normal(k1, (B, C), jnp.float32)
    int_target = jax.random.randint(k2, (B,), 0, C)
    multi_target = (jax.random.uniform(k3, (B, C)) > 0.5).astype(jnp.float32)
    linear_weight = 0.1 * jax.random.normal(k4, (C, H), jnp.float32)  # classifier W
    class_weight = jnp.linspace(0.5, 1.5, C).astype(jnp.float32)
    hierar_relations = {0: [1, 2], 3: [4, 5, 6], 7: []}
    TOL = 5e-4

    # 1) Weighted softmax cross-entropy (default loss_type, single-label).
    ce = ClassificationLoss(C, class_weight=class_weight, multilabel=False,
                            loss_type='SOFTMAX_CROSS_ENTROPY')
    loss_ce = jax.block_until_ready(ce(logits, int_target))
    logp = jax.nn.log_softmax(logits, axis=-1)
    nll = -logp[jnp.arange(B), int_target]
    w = class_weight[int_target]
    ref_ce = jnp.sum(w * nll) / jnp.sum(w)
    assert abs(float(loss_ce) - float(ref_ce)) < TOL, (loss_ce, ref_ce)

    # 1b) NLLLoss on log-probabilities (same reference value).
    nllmod = ClassificationLoss(C, class_weight=class_weight, multilabel=False,
                                loss_type='NEGATIVE_LOG_LIKELIHOOD')
    loss_nll = jax.block_until_ready(nllmod(logp, int_target))
    assert abs(float(loss_nll) - float(ref_ce)) < TOL, (loss_nll, ref_ce)

    # 1c) Ragged batch (B=13, not a multiple of 8) exercises padding.
    loss_ce13 = jax.block_until_ready(ce(logits[:13], int_target[:13]))
    nll13 = -logp[:13][jnp.arange(13), int_target[:13]]
    w13 = class_weight[int_target[:13]]
    ref_ce13 = jnp.sum(w13 * nll13) / jnp.sum(w13)
    assert abs(float(loss_ce13) - float(ref_ce13)) < TOL, (loss_ce13, ref_ce13)

    # 2) Softmax focal loss.
    sfoc = ClassificationLoss(C, multilabel=False,
                              loss_type='SOFTMAX_FOCAL_CROSS_ENTROPY')
    loss_sfoc = jax.block_until_ready(sfoc(logits, int_target))
    p_all = jax.nn.softmax(logits, axis=-1)
    pt = p_all[jnp.arange(B), int_target]
    ref_sfoc = jnp.mean(-0.25 * (1 - pt) ** 2 * jnp.log(pt + 1e-9))
    assert abs(float(loss_sfoc) - float(ref_sfoc)) < TOL, (loss_sfoc, ref_sfoc)

    # 3) Sigmoid focal loss + hierarchical recursive regularization.
    foc = ClassificationLoss(C, multilabel=True, use_hierar=True,
                             loss_type='SIGMOID_FOCAL_CROSS_ENTROPY',
                             hierar_penalty=1e-6, hierar_relations=hierar_relations)
    loss_foc = jax.block_until_ready(foc(logits, multi_target, linear_weight))
    p = jax.nn.sigmoid(logits)
    t = multi_target
    focal_ref = jnp.mean(-0.25 * t * (1 - p) ** 2 * jnp.log(p + 1e-9)
                         - 0.75 * (1 - t) * p ** 2 * jnp.log(1 - p + 1e-9))
    reg_ref = 0.0
    for par, kids in hierar_relations.items():
        for c in kids:
            reg_ref += 0.5 * jnp.sum((linear_weight[par] - linear_weight[c]) ** 2)
    ref_foc = focal_ref + 1e-6 * reg_ref
    assert abs(float(loss_foc) - float(ref_foc)) < TOL, (loss_foc, ref_foc)

    # 4) BCEWithLogits, multilabel, broadcast class weights.
    bce = ClassificationLoss(C, class_weight=class_weight, multilabel=True,
                             loss_type='BCE_WITH_LOGITS')
    loss_bce = jax.block_until_ready(bce(logits, multi_target))
    x = logits
    ref_bce = jnp.mean(class_weight[None, :] *
                       (jnp.maximum(x, 0) - x * t + jnp.log1p(jnp.exp(-jnp.abs(x)))))
    assert abs(float(loss_bce) - float(ref_bce)) < TOL, (loss_bce, ref_bce)

    # 4b) Ragged BCE (exercises the in-kernel row mask).
    loss_bce13 = jax.block_until_ready(bce(logits[:13], multi_target[:13]))
    x13, t13 = logits[:13], multi_target[:13]
    ref_bce13 = jnp.mean(class_weight[None, :] *
                         (jnp.maximum(x13, 0) - x13 * t13 +
                          jnp.log1p(jnp.exp(-jnp.abs(x13)))))
    assert abs(float(loss_bce13) - float(ref_bce13)) < TOL, (loss_bce13, ref_bce13)

    # 4c) bf16 logits stream straight into the kernel (no wrapper f32 upcast).
    logits_bf16 = logits.astype(jnp.bfloat16)
    loss_bf16 = jax.block_until_ready(bce(logits_bf16, multi_target))
    xb = logits_bf16.astype(jnp.float32)
    tb16 = multi_target.astype(jnp.bfloat16).astype(jnp.float32)
    ref_bf16 = jnp.mean(class_weight[None, :] *
                        (jnp.maximum(xb, 0) - xb * tb16 +
                         jnp.log1p(jnp.exp(-jnp.abs(xb)))))
    assert abs(float(loss_bf16) - float(ref_bf16)) < 4 * TOL, (loss_bf16, ref_bf16)

    print("KERNEL_OK")
</pallas_src>

<mosaic_0001>
module attributes {stable_mosaic.version = 11 : i64} {
  func.func @_weighted_nll_kernel(%arg0: i32, %arg1: i32, %arg2: memref<16x32xf32, #tpu.memory_space<vmem>>, %arg3: memref<16x1xi32, #tpu.memory_space<vmem>>, %arg4: memref<1x32xf32, #tpu.memory_space<vmem>>, %arg5: memref<8x128xf32, #tpu.memory_space<vmem>>, %arg6: memref<8x128xf32, #tpu.memory_space<vmem>>, %arg7: memref<16x1xf32, #tpu.memory_space<vmem>>, %arg8: memref<16x1xf32, #tpu.memory_space<vmem>>) attributes {dimension_semantics = [#tpu.dimension_semantics<parallel>, #tpu.dimension_semantics<arbitrary>], iteration_bounds = array<i64: 1, 1>, scalar_prefetch = 0 : i64, scratch_operands = 2 : i64, tpu.core_type = #tpu.core_type<tc>, window_params = [{transform_indices = @transform_0, window_bounds = array<i64: 16, 32>}, {transform_indices = @transform_1, window_bounds = array<i64: 16, 1>}, {pipeline_mode = #tpu.pipeline_mode<synchronous>, transform_indices = @transform_2, window_bounds = array<i64: 1, 32>}, {transform_indices = @transform_3, window_bounds = array<i64: 8, 128>}, {transform_indices = @transform_4, window_bounds = array<i64: 8, 128>}]} {
    %c0_i32 = arith.constant 0 : i32
    %0 = arith.cmpi eq, %arg1, %c0_i32 : i32
    %1 = arith.extui %0 : i1 to i32
    %c0_i32_0 = arith.constant 0 : i32
    %2 = arith.cmpi ne, %1, %c0_i32_0 : i32
    scf.if %2 {
      %cst_19 = arith.constant 0.000000e+00 : f32
      %38 = vector.broadcast %cst_19 : f32 to vector<16x1xf32>
      %c0_20 = arith.constant 0 : index
      %c0_21 = arith.constant 0 : index
      %39 = vector.load %arg7[%c0_20, %c0_21] : memref<16x1xf32, #tpu.memory_space<vmem>>, vector<16x1xf32>
      tpu.vector_store %arg7[%c0_20, %c0_21], %38 {strides = array<i32>} : memref<16x1xf32, #tpu.memory_space<vmem>>, vector<16x1xf32>,
      %cst_22 = arith.constant 0.000000e+00 : f32
      %40 = vector.broadcast %cst_22 : f32 to vector<16x1xf32>
      %c0_23 = arith.constant 0 : index
      %c0_24 = arith.constant 0 : index
      %41 = vector.load %arg8[%c0_23, %c0_24] : memref<16x1xf32, #tpu.memory_space<vmem>>, vector<16x1xf32>
      tpu.vector_store %arg8[%c0_23, %c0_24], %40 {strides = array<i32>} : memref<16x1xf32, #tpu.memory_space<vmem>>, vector<16x1xf32>,
    } else {
    }
    %c0 = arith.constant 0 : index
    %c0_1 = arith.constant 0 : index
    %3 = vector.load %arg2[%c0, %c0_1] : memref<16x32xf32, #tpu.memory_space<vmem>>, vector<16x32xf32>
    %c0_2 = arith.constant 0 : index
    %c0_3 = arith.constant 0 : index
    %4 = vector.load %arg3[%c0_2, %c0_3] : memref<16x1xi32, #tpu.memory_space<vmem>>, vector<16x1xi32>
    %5 = tpu.iota {dimensions = array<i32: 1>} : vector<16x32xi32>
    %6 = vector.broadcast %4 : vector<16x1xi32> to vector<16x32xi32>
    %7 = arith.cmpi eq, %5, %6 : vector<16x32xi32>
    %8 = arith.extui %7 : vector<16x32xi1> to vector<16x32xi32>
    %9 = arith.sitofp %8 : vector<16x32xi32> to vector<16x32xf32>
    %c0_4 = arith.constant 0 : index
    %c0_5 = arith.constant 0 : index
    %10 = vector.load %arg4[%c0_4, %c0_5] : memref<1x32xf32, #tpu.memory_space<vmem>>, vector<1x32xf32>
    %cst = arith.constant dense<0xFF800000> : vector<16xf32>
    %11 = vector.multi_reduction <maximumf>, %3, %cst [1] : vector<16x32xf32> to vector<16xf32>
    %12 = vector.shape_cast %11 : vector<16xf32> to vector<16x1xf32>
    %13 = vector.broadcast %12 : vector<16x1xf32> to vector<16x32xf32>
    %14 = arith.subf %3, %13 : vector<16x32xf32>
    %15 = math.exp %14 : vector<16x32xf32>
    %cst_6 = arith.constant dense<0.000000e+00> : vector<16xf32>
    %16 = vector.multi_reduction <add>, %15, %cst_6 [1] : vector<16x32xf32> to vector<16xf32>
    %17 = vector.shape_cast %16 : vector<16xf32> to vector<16x1xf32>
    %18 = math.log %17 : vector<16x1xf32>
    %19 = arith.addf %12, %18 : vector<16x1xf32>
    %20 = vector.broadcast %19 : vector<16x1xf32> to vector<16x32xf32>
    %21 = arith.subf %20, %3 : vector<16x32xf32>
    %22 = vector.broadcast %10 : vector<1x32xf32> to vector<16x32xf32>
    %23 = arith.mulf %9, %22 : vector<16x32xf32>
    %c0_7 = arith.constant 0 : index
    %c0_8 = arith.constant 0 : index
    %24 = vector.load %arg7[%c0_7, %c0_8] : memref<16x1xf32, #tpu.memory_space<vmem>>, vector<16x1xf32>
    %25 = arith.mulf %23, %21 : vector<16x32xf32>
    %cst_9 = arith.constant dense<0.000000e+00> : vector<16xf32>
    %26 = vector.multi_reduction <add>, %25, %cst_9 [1] : vector<16x32xf32> to vector<16xf32>
    %27 = vector.shape_cast %26 : vector<16xf32> to vector<16x1xf32>
    %28 = arith.addf %24, %27 : vector<16x1xf32>
    %c0_10 = arith.constant 0 : index
    %c0_11 = arith.constant 0 : index
    %29 = vector.load %arg7[%c0_10, %c0_11] : memref<16x1xf32, #tpu.memory_space<vmem>>, vector<16x1xf32>
    tpu.vector_store %arg7[%c0_10, %c0_11], %28 {strides = array<i32>} : memref<16x1xf32, #tpu.memory_space<vmem>>, vector<16x1xf32>,
    %c0_12 = arith.constant 0 : index
    %c0_13 = arith.constant 0 : index
    %30 = vector.load %arg8[%c0_12, %c0_13] : memref<16x1xf32, #tpu.memory_space<vmem>>, vector<16x1xf32>
    %cst_14 = arith.constant dense<0.000000e+00> : vector<16xf32>
    %31 = vector.multi_reduction <add>, %23, %cst_14 [1] : vector<16x32xf32> to vector<16xf32>
    %32 = vector.shape_cast %31 : vector<16xf32> to vector<16x1xf32>
    %33 = arith.addf %30, %32 : vector<16x1xf32>
    %c0_15 = arith.constant 0 : index
    %c0_16 = arith.constant 0 : index
    %34 = vector.load %arg8[%c0_15, %c0_16] : memref<16x1xf32, #tpu.memory_space<vmem>>, vector<16x1xf32>
    tpu.vector_store %arg8[%c0_15, %c0_16], %33 {strides = array<i32>} : memref<16x1xf32, #tpu.memory_space<vmem>>, vector<16x1xf32>,
    %c0_i32_17 = arith.constant 0 : i32
    %35 = arith.cmpi eq, %arg1, %c0_i32_17 : i32
    %36 = arith.extui %35 : i1 to i32
    %c0_i32_18 = arith.constant 0 : i32
    %37 = arith.cmpi ne, %36, %c0_i32_18 : i32
    scf.if %37 {
      %c0_19 = arith.constant 0 : index
      %c0_20 = arith.constant 0 : index
      %38 = vector.load %arg7[%c0_19, %c0_20] : memref<16x1xf32, #tpu.memory_space<vmem>>, vector<16x1xf32>
      %cst_21 = arith.constant dense<0.000000e+00> : vector<16xf32>
      %39 = vector.multi_reduction <add>, %38, %cst_21 [1] : vector<16x1xf32> to vector<16xf32>
      %40 = vector.shape_cast %39 : vector<16xf32> to vector<16x1xf32>
      %cst_22 = arith.constant dense<0.000000e+00> : vector<1xf32>
      %41 = vector.multi_reduction <add>, %40, %cst_22 [0] : vector<16x1xf32> to vector<1xf32>
      %42 = vector.shape_cast %41 : vector<1xf32> to vector<1x1xf32>
      %43 = vector.shape_cast %42 : vector<1x1xf32> to vector<1x1xf32>
      %44 = vector.broadcast %43 : vector<1x1xf32> to vector<8x128xf32>
      %c0_23 = arith.constant 0 : index
      %c0_24 = arith.constant 0 : index
      %45 = vector.load %arg5[%c0_23, %c0_24] : memref<8x128xf32, #tpu.memory_space<vmem>>, vector<8x128xf32>
      tpu.vector_store %arg5[%c0_23, %c0_24], %44 {strides = array<i32>} : memref<8x128xf32, #tpu.memory_space<vmem>>, vector<8x128xf32>,
      %c0_25 = arith.constant 0 : index
      %c0_26 = arith.constant 0 : index
      %46 = vector.load %arg8[%c0_25, %c0_26] : memref<16x1xf32, #tpu.memory_space<vmem>>, vector<16x1xf32>
      %cst_27 = arith.constant dense<0.000000e+00> : vector<16xf32>
      %47 = vector.multi_reduction <add>, %46, %cst_27 [1] : vector<16x1xf32> to vector<16xf32>
      %48 = vector.shape_cast %47 : vector<16xf32> to vector<16x1xf32>
      %cst_28 = arith.constant dense<0.000000e+00> : vector<1xf32>
      %49 = vector.multi_reduction <add>, %48, %cst_28 [0] : vector<16x1xf32> to vector<1xf32>
      %50 = vector.shape_cast %49 : vector<1xf32> to vector<1x1xf32>
      %51 = vector.shape_cast %50 : vector<1x1xf32> to vector<1x1xf32>
      %52 = vector.broadcast %51 : vector<1x1xf32> to vector<8x128xf32>
      %c0_29 = arith.constant 0 : index
      %c0_30 = arith.constant 0 : index
      %53 = vector.load %arg6[%c0_29, %c0_30] : memref<8x128xf32, #tpu.memory_space<vmem>>, vector<8x128xf32>
      tpu.vector_store %arg6[%c0_29, %c0_30], %52 {strides = array<i32>} : memref<8x128xf32, #tpu.memory_space<vmem>>, vector<8x128xf32>,
    } else {
    }
    return
  }
  func.func @transform_0(%arg0: i32, %arg1: i32) -> (i32, i32) {
    %c1_i32 = arith.constant 1 : i32
    %0 = arith.muli %arg0, %c1_i32 : i32
    %1 = arith.addi %0, %arg1 : i32
    %c0_i32 = arith.constant 0 : i32
    %c0_i32_0 = arith.constant 0 : i32
    return %1, %c0_i32 : i32, i32
  }
  func.func @transform_1(%arg0: i32, %arg1: i32) -> (i32, i32) {
    %c1_i32 = arith.constant 1 : i32
    %0 = arith.muli %arg0, %c1_i32 : i32
    %1 = arith.addi %0, %arg1 : i32
    %c0_i32 = arith.constant 0 : i32
    %c0_i32_0 = arith.constant 0 : i32
    return %1, %c0_i32 : i32, i32
  }
  func.func @transform_2(%arg0: i32, %arg1: i32) -> (i32, i32) {
    %c0_i32 = arith.constant 0 : i32
    %c0_i32_0 = arith.constant 0 : i32
    %c0_i32_1 = arith.constant 0 : i32
    return %c0_i32, %c0_i32_0 : i32, i32
  }
  func.func @transform_3(%arg0: i32, %arg1: i32) -> (i32, i32) {
    %c0_i32 = arith.constant 0 : i32
    %c0_i32_0 = arith.constant 0 : i32
    return %arg0, %c0_i32 : i32, i32
  }
  func.func @transform_4(%arg0: i32, %arg1: i32) -> (i32, i32) {
    %c0_i32 = arith.constant 0 : i32
    %c0_i32_0 = arith.constant 0 : i32
    return %arg0, %c0_i32 : i32, i32
  }
}

</mosaic_0001>

<bundles_post_ra>
// kernel: tpu_custom_call.1
= control target key start
LH: loop header
LB: loop body
LE: loop exit
PB: predicated region body
PF: predicated region fallthrough
CT: control target
= control target key end

     0   :  { %10 = vsyncpa [#allocation5], 0  ;;  %vm90_vm0 = vcmask 261120   ;;  %s386_s0 = inlined_call_operand.vmem [shape: f32[16,32], index: 0, kind: input, shape index: {}]   ;;  %s387_s1 = inlined_call_operand.vmem [shape: s32[16,1], index: 1, kind: input, shape index: {}]   ;;  %s388_s2 = inlined_call_operand.vmem [shape: f32[1,32], index: 2, kind: input, shape index: {}]   ;;  %s389_s3 = inlined_call_operand.hbm [shape: f32[8,128], index: 3, kind: output, shape index: {0}]   ;;  %s390_s4 = inlined_call_operand.hbm [shape: f32[8,128], index: 4, kind: output, shape index: {1}]  }
   0x1   :  { %v71_v0 = vld [vmem:[%s386_s0] sm:$0xff]  ;;  %v72_v1 = vld [vmem:[%s386_s0 + $0x8] sm:$0xff] }
   0x2   :  { %11 = vsyncpa [#allocation7], 0  ;;  %v91_v2 = vsel %vm90_vm0, %v71_v0, -inf  ;;  %v94_v3 = vsel %vm90_vm0, %v72_v1, -inf  ;;  %v73_v4 = vld [vmem:[%s387_s1] sm:$0xff]  ;;  %v298_v5 = vmov 0   ;;  %v75_v18 = vlaneseq }
   0x3   :  { %92 = vmax.xlane.f32.xlu0 %v91_v2  ;;  %241 = vset.pattern.permute.xlu1 %v298_v5  ;;  %v74_v16 = vld [vmem:[%s387_s1 + $0x8] sm:$0xff]  ;;  %v235_v24 = vld [vmem:[%s388_s2] ss:$0 sm:$0xff]  ;;  %v299_v25 = vmov 0.0   ;;  %vm66_vm3 = vcmask 7168   ;;  %s300_s1 = smov [#allocation4]  }
   0x4   :  { %240 = vset.pattern.permute.xlu0 %v298_v5  ;;  %v76_v20 = vand.u32 127, %v75_v18  ;;  %67 = vst.msk [vmem:[#allocation2] sm:$0xff] %vm66_vm3, %v299_v25  ;;  %68 = vst.msk [vmem:[#allocation2 + $0x8] sm:$0xff] %vm66_vm3, %v299_v25  ;;  %s199_s2 = sshll.u32 %s300_s1, 4  ;;  %s301_s24 = smov [#allocation6]   ;;  %s200_s2 = int_to_ptr.vmem [resolvable:$true] %s199_s2 }
   0x5   :  { %69 = vst.msk [vmem:[#allocation3] sm:$0xff] %vm66_vm3, %v299_v25  ;;  %70 = vst.msk [vmem:[#allocation3 + $0x8] sm:$0xff] %vm66_vm3, %v299_v25  ;;  %s209_s25 = sshll.u32 %s301_s24, 4  ;;  %s250_s26 = scalar_lea.vmem %s200_s2, 128  ;;  %s210_s25 = int_to_ptr.vmem [resolvable:$true] %s209_s25 }
   0x6   :  { %p251_p0 = scmp.ne.s32.totalorder %s200_s2, %s250_s26  ;;  %p255_p1 = scmp.lt.s32.totalorder %s200_s2, %s200_s2 }
   0x7   :  { %95 = vmax.xlane.f32.xlu0 %v94_v3  ;;  %p256_p2 = scmp.lt.s32.totalorder %s250_s26, %s250_s26 }
   0x9   :  { %p257_p3 = por %p256_p2, %p255_p1 }
   0xb   :  { %v125_v43 = vld [vmem:[#allocation2] sm:$0xff]  ;;  %v126_v46 = vld [vmem:[#allocation2 + $0x8] sm:$0xff]  ;;  %p258_p4 = pnand %p257_p3, %p251_p0 }
   0xc   :  { %v140_v47 = vld [vmem:[#allocation3] sm:$0xff]  ;;  %v141_v52 = vld [vmem:[#allocation3 + $0x8] sm:$0xff] }
  0x1d   :  { %78 = vperm.xlu0 %240, %v73_v4  }
  0x90   :  { %v93_v6 = vpop.xlane.xlu0 %92 }
  0x91   :  { %v97_v7 = vsub.f32 %v71_v0, %v93_v6 }
  0x93   :  { %v99_v8 = vmul.f32 1.442695, %v97_v7 }
  0x94   :  { %v96_v9 = vpop.xlane.xlu0 %95 }
  0x95   :  { %242 = vpow2.f32 %v99_v8  ;;  %v98_v10 = vsub.f32 %v72_v1, %v96_v9 }
  0x97   :  { %v101_v11 = vmul.f32 1.442695, %v98_v10 }
  0x99   :  { %244 = vpow2.f32 %v101_v11 }
  0x9c   :  { %v79_v21 = vpop.permute.xlu0 %78 }
  0x9d   :  { %vm83_vm1 = vcmp.eq.s32.totalorder %v76_v20, %v79_v21 }
  0x9e   :  { %v233_v26 = vsel %vm83_vm1, 1.0, %v299_v25 }
  0x9f   :  { %v243_v12 = vpop.eup %242  ;;  %v123_v29 = vmul.f32 %v235_v24, %v233_v26 }
  0xa0   :  { %v103_v13 = vsel %vm90_vm0, %v243_v12, 0.0 }
  0xa1   :  { %104 = vadd.xlane.f32.xlu1 %v103_v13  ;;  %v142_v41 = vsel %vm90_vm0, %v123_v29, 0.0 }
  0xa3   :  { %v245_v14 = vpop.eup %244 }
  0xa4   :  { %v106_v15 = vsel %vm90_vm0, %v245_v14, 0.0 }
  0xa5   :  { %107 = vadd.xlane.f32.xlu1 %v106_v15 }
  0xb6   :  { %81 = vperm.xlu1 %241, %v74_v16  }
 0x12e   :  { %v105_v17 = vpop.xlane.xlu1 %104 }
 0x12f   :  { %246 = vlog2.f32 %v105_v17 }
 0x132   :  { %v108_v19 = vpop.xlane.xlu1 %107 }
 0x133   :  { %248 = vlog2.f32 %v108_v19 }
 0x136   :  { %v82_v22 = vpop.permute.xlu1 %81 }
 0x137   :  { %vm84_vm2 = vcmp.eq.s32.totalorder %v76_v20, %v82_v22 }
 0x138   :  { %v234_v31 = vsel %vm84_vm2, 1.0, %v299_v25 }
 0x139   :  { %v247_v23 = vpop.eup %246  ;;  %v124_v35 = vmul.f32 %v235_v24, %v234_v31 }
 0x13a   :  { %v110_v27 = vmul.f32 0.6931472, %v247_v23 }
 0x13b   :  { %v145_v42 = vsel %vm90_vm0, %v124_v35, 0.0 }
 0x13c   :  { %v113_v28 = vadd.f32 %v110_v27, %v93_v6 }
 0x13d   :  { %v249_v30 = vpop.eup %248 }
 0x13e   :  { %v112_v32 = vmul.f32 0.6931472, %v249_v30  ;;  %v115_v33 = vsub.f32 %v113_v28, %v71_v0 }
 0x140   :  { %v114_v34 = vadd.f32 %v112_v32, %v96_v9  ;;  %v127_v36 = vmul.f32 %v123_v29, %v115_v33 }
 0x142   :  { %v129_v37 = vsel %vm90_vm0, %v127_v36, 0.0  ;;  %v116_v38 = vsub.f32 %v114_v34, %v72_v1 }
 0x143   :  { %130 = vadd.xlane.f32.xlu1 %v129_v37 }
 0x144   :  { %v128_v39 = vmul.f32 %v124_v35, %v116_v38 }
 0x146   :  { %v132_v40 = vsel %vm90_vm0, %v128_v39, 0.0 }
 0x147   :  { %133 = vadd.xlane.f32.xlu0 %v132_v40  ;;  %143 = vadd.xlane.f32.xlu1 %v142_v41 }
 0x14b   :  { %146 = vadd.xlane.f32.xlu1 %v145_v42 }
 0x1d0   :  { %v131_v44 = vpop.xlane.xlu1 %130 }
 0x1d1   :  { %v135_v45 = vadd.f32 %v131_v44, %v125_v43 }
 0x1d3   :  { %138 = vst.msk [vmem:[#allocation2] sm:$0xff] %vm66_vm3, %v135_v45 }
 0x1d4   :  { %v134_v48 = vpop.xlane.xlu0 %133  ;;  %v144_v49 = vpop.xlane.xlu1 %143 }
 0x1d5   :  { %v136_v50 = vadd.f32 %v134_v48, %v126_v46  ;;  %v148_v51 = vadd.f32 %v144_v49, %v140_v47 }
 0x1d7   :  { %139 = vst.msk [vmem:[#allocation2 + $0x8] sm:$0xff] %vm66_vm3, %v136_v50  ;;  %150 = vst.msk [vmem:[#allocation3] sm:$0xff] %vm66_vm3, %v148_v51 }
 0x1d8   :  { %v147_v53 = vpop.xlane.xlu1 %146 }
 0x1d9   :  { %v149_v54 = vadd.f32 %v147_v53, %v141_v52 }
 0x1da   :  { %v155_v55 = vld [vmem:[#allocation2] sm:$0xff] }
 0x1db   :  { %151 = vst.msk [vmem:[#allocation3 + $0x8] sm:$0xff] %vm66_vm3, %v149_v54  ;;  %v159_v57 = vsel %vm66_vm3, %v155_v55, 0.0 }
 0x1de   :  { %v156_v56 = vld [vmem:[#allocation2 + $0x8] sm:$0xff]  ;;  %v174_v60 = vld [vmem:[#allocation3] sm:$0xff] }
 0x1df   :  { %v160_v58 = vsel %vm66_vm3, %v156_v56, 0.0  ;;  %v178_v63 = vsel %vm66_vm3, %v174_v60, 0.0 }
 0x1e0   :  { %v161_v59 = vadd.f32 %v160_v58, %v159_v57 }
 0x1e2   :  { %v162_v61 = vrot.slane %v161_v59, 4  ;;  %v175_v62 = vld [vmem:[#allocation3 + $0x8] sm:$0xff] }
 0x1e3   :  { %v179_v0 = vsel %vm66_vm3, %v175_v62, 0.0 }
 0x1e4   :  { %v163_v1 = vadd.f32 %v162_v61, %v161_v59  ;;  %v180_v2 = vadd.f32 %v179_v0, %v178_v63 }
 0x1e6   :  { %v164_v3 = vrot.slane %v163_v1, 2  ;;  %v181_v4 = vrot.slane %v180_v2, 4 }
 0x1e8   :  { %v165_v5 = vadd.f32 %v164_v3, %v163_v1  ;;  %v182_v6 = vadd.f32 %v181_v4, %v180_v2 }
 0x1ea   :  { %v166_v7 = vrot.slane %v165_v5, 1  ;;  %v183_v8 = vrot.slane %v182_v6, 2 }
 0x1ec   :  { %v167_v9 = vadd.f32 %v166_v7, %v165_v5  ;;  %v184_v10 = vadd.f32 %v183_v8, %v182_v6 }
 0x1ee   :  { %170 = vperm.xlu1 %241, %v167_v9   ;;  %v185_v11 = vrot.slane %v184_v10, 1 }
 0x1f0   :  { %v186_v12 = vadd.f32 %v185_v11, %v184_v10 }
 0x1f2   :  { %189 = vperm.xlu0 %240, %v186_v12  }
 0x26d   :  { %v171_v13 = vpop.permute.xlu1 %170 }
 0x26e   :  { %173 = vst [vmem:[#allocation4] sm:$0xff] %v171_v13 }
 0x26f   :  { %261 = shalt.err (!%p258_p4)
}
 0x270   :  { %s262_s29 = scalar_lea.hbm %s389_s3, 128 }
 0x271   :  { %p263_p5 = scmp.ne.s32.totalorder %s389_s3, %s262_s29  ;;  %p266_p6 = scmp.lt.u32.totalorder %s262_s29, %s389_s3 }
 0x273   :  { %p268_p7 = pnand %p266_p6, %p263_p5 }
 0x275   :  { %271 = shalt.err (!%p268_p7)
}
 0x276   :  { %202 = dma.vmem_to_hbm [thread:$0]  %s200_s2, 128, %s389_s3, [#allocation5]   ;;  %v190_v14 = vpop.permute.xlu0 %189 }
 0x277   :  { %192 = vst [vmem:[#allocation6] sm:$0xff] %v190_v14  ;;  %s272_s10 = scalar_lea.vmem %s210_s25, 128  ;;  %p277_p9 = scmp.lt.s32.totalorder %s210_s25, %s210_s25 }
 0x278   :  { %p273_p8 = scmp.ne.s32.totalorder %s210_s25, %s272_s10  ;;  %p278_p10 = scmp.lt.s32.totalorder %s272_s10, %s272_s10 }
 0x27a   :  { %p279_p11 = por %p278_p10, %p277_p9 }
 0x27c   :  { %p280_p12 = pnand %p279_p11, %p273_p8 }
 0x27e   :  { %283 = shalt.err (!%p280_p12)
}
 0x27f   :  { %s284_s13 = scalar_lea.hbm %s390_s4, 128 }
 0x280   :  { %p285_p13 = scmp.ne.s32.totalorder %s390_s4, %s284_s13  ;;  %p288_p0 = scmp.lt.u32.totalorder %s284_s13, %s390_s4 }
 0x282   :  { %p290_p1 = pnand %p288_p0, %p285_p13 }
 0x284   :  { %293 = shalt.err (!%p290_p1)
}
 0x285   :  { %212 = dma.vmem_to_hbm [thread:$0]  %s210_s25, 128, %s390_s4, [#allocation7]  }
 0x286   :  { %294 = dma.done.wait [#allocation5], 128  }
 0x287   :  { %295 = vsyncadd [#allocation5], 4294967168 }
 0x288   :  { %296 = dma.done.wait [#allocation7], 128  }
 0x289   :  { %297 = vsyncadd [#allocation7], 4294967168 }
 0x28a   :  { %219 = vsyncpa [#allocation5], 1 }
 0x28b   :  { %220 = vsyncpa [#allocation7], 1 }

</bundles_post_ra>
